<compile_context>
chip_gen: v5e
topology: v5e:2x2
jax: 0.10.0
libtpu: 0.0.40
codegen_flags: <defaults>
</compile_context>

<pallas_src>
import numpy as np
import jax
import jax.numpy as jnp
from jax.experimental import pallas as pl
from jax.experimental.pallas import tpu as pltpu


# ------------------------------------------------------------------ roll convention probe
_ROLL_IS_JNP = None


def _roll_matches_jnp():
    """Pin pltpu.roll's shift-sign convention with one tiny pallas_call (cached).

    All rotations in the fused kernel are static lane rotations; this makes the tap
    gather robust to the roll convention of the installed JAX/Mosaic version.
    """
    global _ROLL_IS_JNP
    if _ROLL_IS_JNP is None:
        def k(x_ref, o_ref):
            o_ref[...] = pltpu.roll(x_ref[...], shift=1, axis=1)
        x = jnp.arange(8 * 128, dtype=jnp.float32).reshape(8, 128)
        y = pl.pallas_call(k, out_shape=jax.ShapeDtypeStruct((8, 128), jnp.float32))(x)
        _ROLL_IS_JNP = bool(jnp.array_equal(y, jnp.roll(x, 1, axis=1)))
    return _ROLL_IS_JNP


# ----------------------------------------------------------------------------- fused kernel
def _make_fused_kernel(block_meta, W0, Sc, roll_is_jnp):
    """block_meta is static python data: [{'cin','cout','dilation','sigma','maxpool'}, ...].

    Canvas layout: (channels, Sc) with Sc = H*W rounded up (zero pad); lane p < H*W maps to
    spatial (row = p // W0, col = p % W0).  Valid data of block b lives at rows < OH_b and
    cols = sigma_b * j (j < OW_b); everything else is forced to 0 by the per-block masks.
    """

    def shift_left(v, off):
        # z[..., p] = v[..., p + off]  (lane rotation; wrapped lanes land in masked region)
        if off == 0:
            return v
        amt = (-off) % Sc if roll_is_jnp else off % Sc
        return pltpu.roll(v, shift=amt, axis=1)

    def shift_right(v, off):
        # z[..., p] = v[..., p - off]
        if off == 0:
            return v
        amt = off % Sc if roll_is_jnp else (-off) % Sc
        return pltpu.roll(v, shift=amt, axis=1)

    def kernel(*refs):
        i = 0
        x_ref = refs[i]; i += 1
        x = x_ref[0]                                            # (Cin, Sc) canvas, f32
        for meta in block_meta:
            w_ref, s_ref, b_ref, mc_ref = refs[i:i + 4]; i += 4
            mp_ref = None
            if meta["maxpool"]:
                mp_ref = refs[i]; i += 1
            dh, dw = meta["dilation"]
            sig = meta["sigma"]

            # im2col: 9 lane-rotated views of the canvas stacked along sublanes.
            taps = []
            for kh in range(3):
                for kw in range(3):
                    taps.append(shift_left(x, kh * dh * W0 + kw * dw * sig))
            patch = jnp.concatenate(taps, axis=0)               # (9*cin, Sc)

            # One big-K GEMM per block: (cout, 9*cin) x (9*cin, Sc) -> (cout, Sc).
            acc = jnp.dot(w_ref[...], patch, preferred_element_type=jnp.float32)

            # Folded BatchNorm(eval) affine + ReLU + static validity mask (lane-dense VPU).
            y = jnp.maximum(acc * s_ref[...] + b_ref[...], 0.0) * mc_ref[...]

            if meta["maxpool"]:
                # MaxPool2d((1,2),(1,2),(0,1)): pair-max via one lane rotation.  Pooled
                # values stay at stride-2 lane positions; the post-pool mask zeroes the rest.
                y = jnp.maximum(y, shift_right(y, sig)) * mp_ref[...]
            x = y

        fcw_ref, fcb_ref, o_ref = refs[i], refs[i + 1], refs[i + 2]
        # Head: AdaptiveMaxPool2d((1,1)) + Flatten + SimpleNeck linear (invalid lanes are 0
        # and valid post-ReLU values are >= 0, so the unmasked global max is exact).
        pooled = jnp.max(x, axis=1, keepdims=True)              # (C_last, 1)
        out = jnp.dot(fcw_ref[...], pooled,
                      preferred_element_type=jnp.float32) + fcb_ref[...]
        o_ref[...] = out.reshape(o_ref.shape).astype(o_ref.dtype)

    return kernel


# ----------------------------------------------------------------------------- wrapper
def _ceil_to(v, m):
    return -(-v // m) * m


def _valid_mask(H, W, Sc, oh, owv, sig):
    """Static {0,1} mask of shape (1, Sc): rows < oh, cols in {sig*j : j < owv}."""
    p = np.arange(Sc)
    row, col = p // W, p % W
    m = (p < H * W) & (row < oh) & (col % sig == 0) & (col < sig * owv)
    return jnp.asarray(m.reshape(1, Sc).astype(np.float32))


def inductive_neck_forward(x_nchw, params):
    """Fused forward: a single pallas_call, grid over the batch dimension."""
    N, C, H, W = x_nchw.shape
    blocks = params["blocks"]
    assert blocks, "num_blocks == 0 not supported by this fused kernel"
    out_dim = params["fc_w"].shape[0]
    S = H * W

    # --- static geometry: canvas lane width (flattened spatial + zero pad, 128-aligned) ---
    sig, max_off = 1, 0
    for b in blocks:
        dh, dw = b["dilation"]
        max_off = max(max_off, 2 * dh * W + 2 * dw * sig)
        if b["maxpool"]:
            sig *= 2
    Sc = _ceil_to(S + max_off, 128)

    # --- operands: padded input canvas + per-block (weights, affine, masks) + fc head -----
    operands = [jnp.pad(x_nchw.reshape(N, C, S), ((0, 0), (0, 0), (0, Sc - S)))]
    in_specs = [pl.BlockSpec((1, C, Sc), lambda n: (n, 0, 0))]

    block_meta = []
    oh, owv, sig = H, W, 1
    flops = 0
    for b in blocks:
        dh, dw = b["dilation"]
        cout, cin = b["w_torch"].shape[0], b["w_torch"].shape[1]
        oh, owv = oh - 2 * dh, owv - 2 * dw
        assert oh > 0 and owv > 0, "input too small for this block stack"
        meta = dict(cin=cin, cout=cout, dilation=(dh, dw), sigma=sig,
                    maxpool=bool(b["maxpool"]))
        block_meta.append(meta)

        ops = [b["w_big"],                               # (cout, 9*cin), K ordered (kh,kw,ci)
               b["scale"].reshape(cout, 1),              # folded BN scale
               b["shift"].reshape(cout, 1),              # folded BN shift
               _valid_mask(H, W, Sc, oh, owv, sig)]      # conv-output validity
        if meta["maxpool"]:
            owv = owv // 2 + 1
            sig *= 2
            ops.append(_valid_mask(H, W, Sc, oh, owv, sig))   # post-pool validity
        operands += ops
        # Grid-invariant params: full-array blocks with constant index maps (kept resident).
        in_specs += [pl.BlockSpec(o.shape, lambda n: (0, 0)) for o in ops]
        flops += 2 * cout * 9 * cin * Sc + 6 * cout * Sc

    dim = blocks[-1]["w_torch"].shape[0]
    operands += [params["fc_w"], params["fc_b"].reshape(out_dim, 1)]
    in_specs += [pl.BlockSpec(params["fc_w"].shape, lambda n: (0, 0)),
                 pl.BlockSpec((out_dim, 1), lambda n: (0, 0))]
    flops = N * (flops + 2 * out_dim * dim)
    bytes_accessed = sum(int(np.prod(o.shape)) * 4 for o in operands) + N * out_dim * 4

    kernel = _make_fused_kernel(block_meta, W, Sc, _roll_matches_jnp())

    out = pl.pallas_call(
        kernel,
        out_shape=jax.ShapeDtypeStruct((N, out_dim, 1), jnp.float32),
        grid=(N,),
        in_specs=in_specs,
        out_specs=pl.BlockSpec((1, out_dim, 1), lambda n: (n, 0, 0)),
        compiler_params=pltpu.CompilerParams(dimension_semantics=("parallel",)),
        cost_estimate=pl.CostEstimate(flops=int(flops), transcendentals=0,
                                      bytes_accessed=int(bytes_accessed)),
    )(*operands)
    return out.reshape(N, out_dim)


# ----------------------------------------------------------------------------- params
def init_params(key, input_dim, output_dim, num_blocks):
    """Mirrors InductiveNeck.init_blocks (CQTNet logic) + the SimpleNeck linear head."""
    blocks = []
    ch_in = input_dim
    ch_out = input_dim
    keys = jax.random.split(key, num_blocks * 5 + 2)
    ki = 0
    eps = 1e-5
    for i in range(1, num_blocks + 1):
        if i % 2 == 0:
            ch_out = ch_out * 2
            dilation = (1, 2)
            maxpool = (i != num_blocks)
        else:
            dilation = (1, 1)
            maxpool = False
        fan_in = ch_in * 9
        w_t = jax.random.normal(keys[ki], (ch_out, ch_in, 3, 3), jnp.float32) * (2.0 / fan_in) ** 0.5; ki += 1
        gamma = 1.0 + 0.1 * jax.random.normal(keys[ki], (ch_out,), jnp.float32); ki += 1
        beta = 0.1 * jax.random.normal(keys[ki], (ch_out,), jnp.float32); ki += 1
        mean = 0.1 * jax.random.normal(keys[ki], (ch_out,), jnp.float32); ki += 1
        var = 0.5 + jax.random.uniform(keys[ki], (ch_out,), jnp.float32); ki += 1
        scale = gamma / jnp.sqrt(var + eps)
        shift = beta - mean * scale
        blocks.append(dict(
            w_torch=w_t,                                                      # (Cout, Cin, 3, 3)
            # (Cout, 9*Cin) with K ordered (kh, kw, ci) -- matches the in-kernel patch rows.
            w_big=jnp.transpose(w_t, (0, 2, 3, 1)).reshape(ch_out, 9 * ch_in),
            scale=scale, shift=shift,
            dilation=dilation, maxpool=maxpool))
        ch_in = ch_out
    dim = ch_out if num_blocks > 0 else input_dim
    fc_w = jax.random.normal(keys[ki], (output_dim, dim), jnp.float32) * (1.0 / dim) ** 0.5; ki += 1
    fc_b = 0.1 * jax.random.normal(keys[ki], (output_dim,), jnp.float32); ki += 1
    return dict(blocks=blocks, fc_w=fc_w, fc_b=fc_b)        # fc_w: (out_dim, dim)


# ----------------------------------------------------------------------------- pure-JAX reference
def reference_forward(x_nchw, params):
    x = x_nchw
    for blk in params["blocks"]:
        dh, dw = blk["dilation"]
        x = jax.lax.conv_general_dilated(
            x, blk["w_torch"], (1, 1), "VALID",
            rhs_dilation=(dh, dw),
            dimension_numbers=("NCHW", "OIHW", "NCHW"),
            precision=jax.lax.Precision.HIGHEST)
        x = x * blk["scale"][None, :, None, None] + blk["shift"][None, :, None, None]
        x = jnp.maximum(x, 0.0)
        if blk["maxpool"]:
            x = jax.lax.reduce_window(
                x, jnp.array(-jnp.inf, x.dtype), jax.lax.max,
                (1, 1, 1, 2), (1, 1, 1, 2),
                ((0, 0), (0, 0), (0, 0), (1, 1)))
    pooled = jnp.max(x, axis=(2, 3))
    return jnp.dot(pooled, params["fc_w"].T,
                   precision=jax.lax.Precision.HIGHEST) + params["fc_b"]


# ----------------------------------------------------------------------------- main
if __name__ == "__main__":
    key = jax.random.PRNGKey(0)
    kx, kp = jax.random.split(key)

    # input_dim=4 channels, H(freq)=16, W(time)=32, num_blocks=4, output_dim=32
    N, C, H, W = 2, 4, 16, 32
    num_blocks, output_dim = 4, 32

    x = jax.random.normal(kx, (N, C, H, W), jnp.float32)
    params = init_params(kp, C, output_dim, num_blocks)

    out = inductive_neck_forward(x, params)
    out = jax.block_until_ready(out)
    assert out.shape == (N, output_dim), out.shape

    ref = reference_forward(x, params)
    if not jnp.allclose(out, ref, atol=1e-3, rtol=1e-3):
        raise AssertionError(
            f"mismatch vs reference: max abs diff = {float(jnp.max(jnp.abs(out - ref)))}")

    print("KERNEL_OK")
</pallas_src>

<mosaic_0001>
module attributes {stable_mosaic.version = 11 : i64} {
  func.func @k(%arg0: memref<8x128xf32, #tpu.memory_space<vmem>>, %arg1: memref<8x128xf32, #tpu.memory_space<vmem>>) attributes {dimension_semantics = [], scalar_prefetch = 0 : i64, scratch_operands = 0 : i64, tpu.core_type = #tpu.core_type<tc>} {
    %c0 = arith.constant 0 : index
    %c0_0 = arith.constant 0 : index
    %0 = vector.load %arg0[%c0, %c0_0] : memref<8x128xf32, #tpu.memory_space<vmem>>, vector<8x128xf32>
    %c1_i32 = arith.constant 1 : i32
    %1 = tpu.dynamic_rotate %0 by %c1_i32 dim 1 : vector<8x128xf32>, i32 -> vector<8x128xf32>
    %c0_1 = arith.constant 0 : index
    %c0_2 = arith.constant 0 : index
    %2 = vector.load %arg1[%c0_1, %c0_2] : memref<8x128xf32, #tpu.memory_space<vmem>>, vector<8x128xf32>
    tpu.vector_store %arg1[%c0_1, %c0_2], %1 {strides = array<i32>} : memref<8x128xf32, #tpu.memory_space<vmem>>, vector<8x128xf32>,
    return
  }
}

</mosaic_0001>

<bundles_post_ra>
// kernel: tpu_custom_call.1
= control target key start
LH: loop header
LB: loop body
LE: loop exit
PB: predicated region body
PF: predicated region fallthrough
CT: control target
= control target key end

     0   :  { %6 = vsyncpa [#allocation3], 0  ;;  %s118_s0 = inlined_call_operand.hbm [shape: f32[8,128], index: 0, kind: input, shape index: {}]   ;;  %s119_s1 = inlined_call_operand.hbm [shape: f32[8,128], index: 1, kind: output, shape index: {}]  }
   0x1   :  { %7 = vsyncpa [#allocation4], 0  ;;  %s13_s8 = sshll.u32 %s118_s0, 4  ;;  %s99_s9 = smov [#allocation2]   ;;  %s14_s8 = int_to_ptr.hbm [resolvable:$true] %s13_s8 }
   0x2   :  { %s15_s10 = sshll.u32 %s99_s9, 4  ;;  %s16_s10 = int_to_ptr.vmem [resolvable:$true] %s15_s10 }
   0x3   :  { %18 = dma.hbm_to_vmem [thread:$0]  %s14_s8, 128, %s16_s10, [#allocation3]  }
   0x4   :  { %95 = dma.done.wait [#allocation3], 128  }
   0x5   :  { %96 = vsyncadd [#allocation3], 4294967168  ;;  %v23_v0 = vld [vmem:[#allocation2] sm:$0xff]  ;;  %s100_s11 = smov 1   ;;  %s101_s12 = smov [#allocation5]  }
   0x6   :  { %24 = vrot.lane.b32.xlu0 %v23_v0, %s100_s11  ;;  %s32_s13 = sshll.u32 %s101_s12, 4  ;;  %s34_s16 = sshll.u32 %s119_s1, 4  ;;  %s33_s13 = int_to_ptr.vmem [resolvable:$true] %s32_s13  ;;  %s35_s16 = int_to_ptr.hbm [resolvable:$true] %s34_s16 }
  0x78   :  { %v25_v1 = vpop.permute.xlu0 %24 }
  0x79   :  { %26 = vst [vmem:[#allocation5] sm:$0xff] %v25_v1 }
  0x7a   :  { %37 = dma.vmem_to_hbm [thread:$0]  %s33_s13, 128, %s35_s16, [#allocation4]  }
  0x7b   :  { %97 = dma.done.wait [#allocation4], 128  }
  0x7c   :  { %98 = vsyncadd [#allocation4], 4294967168 }
  0x7d   :  { %42 = vsyncpa [#allocation3], 1 }
  0x7e   :  { %43 = vsyncpa [#allocation4], 1 }

</bundles_post_ra>
